<compile_context>
chip_gen: v6e
topology: v6e:2x2x1
jax: 0.10.0
libtpu: 0.0.40
codegen_flags: <defaults>
</compile_context>

<pallas_src>
import math
import functools

import jax
import jax.numpy as jnp
from jax.experimental import pallas as pl
from jax.experimental.pallas import tpu as pltpu

LANE = 128


def _round_up(x, m):
    return (x + m - 1) // m * m


# ----------------------------------------------------------------------------
# One-time parameter preparation (hoisted out of the per-step / per-seq call).
# ----------------------------------------------------------------------------
def prepare_cell_gru_params(w_xh, w_h_c, w_h_u, w_h_y):
    """Fuse / pad / cast the CellGRU weights once.

    Returns (w_in_bf16 (F,2U), w_gates_bf16 (U,2U), w_hy_pad_bf16 (U,O_pad), O).
    """
    U = w_xh.shape[1]
    O = w_h_y.shape[1]
    O_pad = _round_up(O, LANE)

    w_gates = jnp.concatenate([w_h_c, w_h_u], axis=1)          # (U, 2U)  f32
    # Algebraic fusion of the input projection into the gate matmul:
    #   (inputs @ w_xh + h) @ w_gates == inputs @ (w_xh @ w_gates) + h @ w_gates
    w_in = w_xh @ w_gates                                       # (F, 2U)  f32
    w_hy_pad = jnp.zeros((U, O_pad), jnp.float32).at[:, :O].set(w_h_y)

    return (w_in.astype(jnp.bfloat16),
            w_gates.astype(jnp.bfloat16),
            w_hy_pad.astype(jnp.bfloat16),
            O)


# ----------------------------------------------------------------------------
# Kernel: one grid step == one recurrent timestep.
# ----------------------------------------------------------------------------
def _cell_gru_seq_kernel(x_ref, h0_ref, c0_ref, win_ref, wg_ref, why_ref,
                         y_ref, hout_ref, h_scr, c_scr,
                         *, units: int, out_features: int, prob: bool):
    U = units
    t = pl.program_id(0)

    # Initialize the carried state from the (1, U) initial h / c at the first step.
    @pl.when(t == 0)
    def _():
        h_scr[...] = jnp.broadcast_to(h0_ref[...], h_scr.shape)
        c_scr[...] = jnp.broadcast_to(c0_ref[...], c_scr.shape)

    # Fused gate pre-activations: two independent bf16 MXU dots, f32 accumulation.
    gates = (jnp.dot(x_ref[...], win_ref[...], preferred_element_type=jnp.float32)
             + jnp.dot(h_scr[...].astype(jnp.bfloat16), wg_ref[...],
                       preferred_element_type=jnp.float32))

    c_tilda = jnp.tanh(gates[:, :U])          # tanh((x_t + h) @ w_h_c)
    gamma_u = jax.nn.sigmoid(gates[:, U:])    # sigmoid((x_t + h) @ w_h_u)

    # c_new = g*c~ + (1-g)*c_prev, rewritten to save one VPU multiply per vreg.
    c_prev = c_scr[...]
    c_new = c_prev + gamma_u * (c_tilda - c_prev)

    # Output projection against the lane-dense padded weight.
    y = jnp.dot(c_new.astype(jnp.bfloat16), why_ref[...],
                preferred_element_type=jnp.float32)

    if prob:
        # Softmax over the real out_features only; padded lanes masked to -inf.
        # (approx reciprocal => rows sum to 1 only to ~1e-3; renormalize downstream
        #  if exact probabilities are required.)
        col = jax.lax.broadcasted_iota(jnp.int32, y.shape, 1)
        y = jnp.where(col < out_features, y, -jnp.inf)
        y_max = jnp.max(y, axis=-1, keepdims=True)
        e = jnp.exp(y - y_max)
        y = e * pl.reciprocal(jnp.sum(e, axis=-1, keepdims=True), approx=True)

    y_ref[...] = y.astype(y_ref.dtype)
    hout_ref[...] = c_new.astype(hout_ref.dtype)

    # Carry the state to the next timestep (module sets h = c_t = c_new).
    c_scr[...] = c_new
    h_scr[...] = c_new


# ----------------------------------------------------------------------------
# Wrappers
# ----------------------------------------------------------------------------
def cell_gru_forward_sequence(inputs_seq, h0, c0, prepared, *, prob=False):
    """Run T recurrent CellGRU steps inside a single pallas_call.

    inputs_seq: (T, B, F) f32.  h0, c0: (1, U) f32.
    Returns (y_seq (T, B, O) f32, h_seq (T, B, U) f32).
    """
    w_in, w_gates, w_hy_pad, O = prepared
    T, B, F = inputs_seq.shape
    U = w_gates.shape[0]
    O_pad = w_hy_pad.shape[1]

    # One cast for the whole sequence (halves the streamed input DMA bytes).
    x_bf16 = inputs_seq.astype(jnp.bfloat16)

    kernel = functools.partial(_cell_gru_seq_kernel,
                               units=U, out_features=O, prob=prob)

    flops = 2 * T * B * (F * 2 * U + U * 2 * U + U * O_pad)
    transcendentals = T * B * (2 * U + (O_pad if prob else 0))
    bytes_accessed = (x_bf16.size * 2 + 2 * U * 4
                      + w_in.size * 2 + w_gates.size * 2 + w_hy_pad.size * 2
                      + T * B * O_pad * 4 + T * B * U * 4)

    y_pad, h_seq = pl.pallas_call(
        kernel,
        out_shape=(
            jax.ShapeDtypeStruct((T, B, O_pad), jnp.float32),
            jax.ShapeDtypeStruct((T, B, U), jnp.float32),
        ),
        grid=(T,),
        in_specs=[
            # streamed per-timestep input slab (leading time dim squeezed)
            pl.BlockSpec((None, B, F), lambda t: (t, 0, 0)),
            # VMEM-resident (constant block index across the whole grid):
            pl.BlockSpec((1, U), lambda t: (0, 0)),          # h0
            pl.BlockSpec((1, U), lambda t: (0, 0)),          # c0
            pl.BlockSpec((F, 2 * U), lambda t: (0, 0)),      # W_in  = w_xh @ [w_h_c|w_h_u]
            pl.BlockSpec((U, 2 * U), lambda t: (0, 0)),      # W_gates = [w_h_c|w_h_u]
            pl.BlockSpec((U, O_pad), lambda t: (0, 0)),      # padded w_h_y
        ],
        out_specs=(
            pl.BlockSpec((None, B, O_pad), lambda t: (t, 0, 0)),
            pl.BlockSpec((None, B, U), lambda t: (t, 0, 0)),
        ),
        scratch_shapes=[
            pltpu.VMEM((B, U), jnp.float32),   # carried h
            pltpu.VMEM((B, U), jnp.float32),   # carried c
        ],
        cost_estimate=pl.CostEstimate(
            flops=flops, transcendentals=transcendentals,
            bytes_accessed=bytes_accessed),
        compiler_params=pltpu.CompilerParams(
            dimension_semantics=("arbitrary",),   # sequential recurrence over time
            vmem_limit_bytes=16 * 1024 * 1024),
    )(x_bf16, h0, c0, w_in, w_gates, w_hy_pad)

    return y_pad[..., :O], h_seq


def cell_gru_forward(inputs, h, c_t, prepared, *, prob=False):
    """Single CellGRU step (the module's forward()); just T=1 of the seq kernel."""
    y_seq, h_seq = cell_gru_forward_sequence(inputs[None], h, c_t, prepared, prob=prob)
    return y_seq[0], h_seq[0]


# ----------------------------------------------------------------------------
# Reference + init helpers
# ----------------------------------------------------------------------------
def xavier_uniform(key, shape, dtype=jnp.float32):
    fan_in, fan_out = shape
    bound = math.sqrt(6.0 / (fan_in + fan_out))
    return jax.random.uniform(key, shape, dtype=dtype, minval=-bound, maxval=bound)


def reference_sequence(inputs_seq, h0, c0, w_xh, w_h_c, w_h_u, w_h_y, prob=False):
    """Pure-JAX f32 reference mirroring the PyTorch module stepped over T steps."""
    h, c = h0, c0
    ys, hs = [], []
    for t in range(inputs_seq.shape[0]):
        x = inputs_seq[t] @ w_xh + h
        c_tilda = jnp.tanh(x @ w_h_c)
        gamma_u = jax.nn.sigmoid(x @ w_h_u)
        c = gamma_u * c_tilda + (1.0 - gamma_u) * c
        h = c
        y = c @ w_h_y
        if prob:
            y = jax.nn.softmax(y, axis=-1)
        ys.append(y)
        hs.append(h)
    return jnp.stack(ys), jnp.stack(hs)


if __name__ == "__main__":
    # Small shapes consistent with the module: batch=8, in_features=16,
    # units=128, out_features=32, and an 8-step sequence for the recurrent path.
    B, F, U, O, T = 8, 16, 128, 32, 8

    root = jax.random.PRNGKey(0)
    k_x, k_wxh, k_whc, k_whu, k_why = jax.random.split(root, 5)

    inputs_seq = jax.random.normal(k_x, (T, B, F), dtype=jnp.float32)

    # Deterministic parameter init mirroring nn.init.xavier_uniform_.
    w_xh = xavier_uniform(k_wxh, (F, U))
    w_h_c = xavier_uniform(k_whc, (U, U))
    w_h_u = xavier_uniform(k_whu, (U, U))
    w_h_y = xavier_uniform(k_why, (U, O))

    # Initial hidden / cell state: zeros(1, units), as in __init__.
    h0 = jnp.zeros((1, U), dtype=jnp.float32)
    c0 = jnp.zeros((1, U), dtype=jnp.float32)

    # One-time weight fusion / padding / bf16 casts (hoisted off the step path).
    prepared = prepare_cell_gru_params(w_xh, w_h_c, w_h_u, w_h_y)

    # ---- single step (the module's forward), prob=False and prob=True ----
    y1, h1 = cell_gru_forward(inputs_seq[0], h0, c0, prepared, prob=False)
    y1p, h1p = cell_gru_forward(inputs_seq[0], h0, c0, prepared, prob=True)
    jax.block_until_ready((y1, h1, y1p, h1p))

    y1_ref, h1_ref = reference_sequence(inputs_seq[:1], h0, c0,
                                        w_xh, w_h_c, w_h_u, w_h_y, prob=False)
    y1p_ref, _ = reference_sequence(inputs_seq[:1], h0, c0,
                                    w_xh, w_h_c, w_h_u, w_h_y, prob=True)
    assert jnp.allclose(y1, y1_ref[0], atol=3e-2, rtol=3e-2)
    assert jnp.allclose(h1, h1_ref[0], atol=3e-2, rtol=3e-2)
    assert jnp.allclose(y1p, y1p_ref[0], atol=3e-2, rtol=3e-2)
    assert jnp.allclose(h1p, h1_ref[0], atol=3e-2, rtol=3e-2)

    # ---- full T-step recurrence inside one pallas_call ----
    y_seq, h_seq = cell_gru_forward_sequence(inputs_seq, h0, c0, prepared, prob=False)
    y_seq_p, h_seq_p = cell_gru_forward_sequence(inputs_seq, h0, c0, prepared, prob=True)
    jax.block_until_ready((y_seq, h_seq, y_seq_p, h_seq_p))

    y_ref, h_ref = reference_sequence(inputs_seq, h0, c0,
                                      w_xh, w_h_c, w_h_u, w_h_y, prob=False)
    y_ref_p, h_ref_p = reference_sequence(inputs_seq, h0, c0,
                                          w_xh, w_h_c, w_h_u, w_h_y, prob=True)

    # bf16 MXU operands (f32 accumulation) compounded over T recurrent steps
    # loosen the tolerance slightly vs. the pure-f32 reference.
    assert jnp.allclose(y_seq, y_ref, atol=5e-2, rtol=5e-2)
    assert jnp.allclose(h_seq, h_ref, atol=5e-2, rtol=5e-2)
    assert jnp.allclose(y_seq_p, y_ref_p, atol=5e-2, rtol=5e-2)
    assert jnp.allclose(h_seq_p, h_ref_p, atol=5e-2, rtol=5e-2)

    print("KERNEL_OK")
</pallas_src>

<mosaic_0001>
module attributes {stable_mosaic.version = 11 : i64} {
  func.func @_cell_gru_seq_kernel(%arg0: i32, %arg1: memref<1x8x16xbf16, #tpu.memory_space<vmem>>, %arg2: memref<1x128xf32, #tpu.memory_space<vmem>>, %arg3: memref<1x128xf32, #tpu.memory_space<vmem>>, %arg4: memref<16x256xbf16, #tpu.memory_space<vmem>>, %arg5: memref<128x256xbf16, #tpu.memory_space<vmem>>, %arg6: memref<128x128xbf16, #tpu.memory_space<vmem>>, %arg7: memref<1x8x128xf32, #tpu.memory_space<vmem>>, %arg8: memref<1x8x128xf32, #tpu.memory_space<vmem>>, %arg9: memref<8x128xf32, #tpu.memory_space<vmem>>, %arg10: memref<8x128xf32, #tpu.memory_space<vmem>>) attributes {dimension_semantics = [#tpu.dimension_semantics<arbitrary>], iteration_bounds = array<i64: 1>, scalar_prefetch = 0 : i64, scratch_operands = 2 : i64, tpu.core_type = #tpu.core_type<tc>, window_params = [{transform_indices = @transform_0, window_bounds = array<i64: 1, 8, 16>}, {pipeline_mode = #tpu.pipeline_mode<synchronous>, transform_indices = @transform_1, window_bounds = array<i64: 1, 128>}, {pipeline_mode = #tpu.pipeline_mode<synchronous>, transform_indices = @transform_2, window_bounds = array<i64: 1, 128>}, {pipeline_mode = #tpu.pipeline_mode<synchronous>, transform_indices = @transform_3, window_bounds = array<i64: 16, 256>}, {pipeline_mode = #tpu.pipeline_mode<synchronous>, transform_indices = @transform_4, window_bounds = array<i64: 128, 256>}, {pipeline_mode = #tpu.pipeline_mode<synchronous>, transform_indices = @transform_5, window_bounds = array<i64: 128, 128>}, {transform_indices = @transform_6, window_bounds = array<i64: 1, 8, 128>}, {transform_indices = @transform_7, window_bounds = array<i64: 1, 8, 128>}]} {
    %c0_i32 = arith.constant 0 : i32
    %0 = arith.cmpi eq, %arg0, %c0_i32 : i32
    %1 = arith.extui %0 : i1 to i32
    %c0_i32_0 = arith.constant 0 : i32
    %2 = arith.cmpi ne, %1, %c0_i32_0 : i32
    scf.if %2 {
      %c0_26 = arith.constant 0 : index
      %c0_27 = arith.constant 0 : index
      %35 = vector.load %arg2[%c0_26, %c0_27] : memref<1x128xf32, #tpu.memory_space<vmem>>, vector<1x128xf32>
      %36 = vector.shape_cast %35 : vector<1x128xf32> to vector<1x128xf32>
      %37 = vector.broadcast %36 : vector<1x128xf32> to vector<8x128xf32>
      %c0_28 = arith.constant 0 : index
      %c0_29 = arith.constant 0 : index
      %38 = vector.load %arg9[%c0_28, %c0_29] : memref<8x128xf32, #tpu.memory_space<vmem>>, vector<8x128xf32>
      tpu.vector_store %arg9[%c0_28, %c0_29], %37 {strides = array<i32>} : memref<8x128xf32, #tpu.memory_space<vmem>>, vector<8x128xf32>,
      %c0_30 = arith.constant 0 : index
      %c0_31 = arith.constant 0 : index
      %39 = vector.load %arg3[%c0_30, %c0_31] : memref<1x128xf32, #tpu.memory_space<vmem>>, vector<1x128xf32>
      %40 = vector.shape_cast %39 : vector<1x128xf32> to vector<1x128xf32>
      %41 = vector.broadcast %40 : vector<1x128xf32> to vector<8x128xf32>
      %c0_32 = arith.constant 0 : index
      %c0_33 = arith.constant 0 : index
      %42 = vector.load %arg10[%c0_32, %c0_33] : memref<8x128xf32, #tpu.memory_space<vmem>>, vector<8x128xf32>
      tpu.vector_store %arg10[%c0_32, %c0_33], %41 {strides = array<i32>} : memref<8x128xf32, #tpu.memory_space<vmem>>, vector<8x128xf32>,
    } else {
    }
    %c0 = arith.constant 0 : index
    %c0_1 = arith.constant 0 : index
    %c0_2 = arith.constant 0 : index
    %3 = vector.load %arg1[%c0, %c0_1, %c0_2] : memref<1x8x16xbf16, #tpu.memory_space<vmem>>, vector<1x8x16xbf16>
    %4 = vector.shape_cast %3 : vector<1x8x16xbf16> to vector<8x16xbf16>
    %c0_3 = arith.constant 0 : index
    %c0_4 = arith.constant 0 : index
    %5 = vector.load %arg4[%c0_3, %c0_4] : memref<16x256xbf16, #tpu.memory_space<vmem>>, vector<16x256xbf16>
    %cst = arith.constant dense<0.000000e+00> : vector<8x256xf32>
    %6 = tpu.matmul %4, %5, %cst {dimension_numbers = #tpu.dot_dimension_numbers<[1], [0], [0], [1], [0, 0, 1, 1], [], []>} : vector<8x16xbf16>, vector<16x256xbf16>, vector<8x256xf32> -> vector<8x256xf32>
    %c0_5 = arith.constant 0 : index
    %c0_6 = arith.constant 0 : index
    %7 = vector.load %arg9[%c0_5, %c0_6] : memref<8x128xf32, #tpu.memory_space<vmem>>, vector<8x128xf32>
    %8 = arith.truncf %7 : vector<8x128xf32> to vector<8x128xbf16>
    %c0_7 = arith.constant 0 : index
    %c0_8 = arith.constant 0 : index
    %9 = vector.load %arg5[%c0_7, %c0_8] : memref<128x256xbf16, #tpu.memory_space<vmem>>, vector<128x256xbf16>
    %cst_9 = arith.constant dense<0.000000e+00> : vector<8x256xf32>
    %10 = tpu.matmul %8, %9, %cst_9 {dimension_numbers = #tpu.dot_dimension_numbers<[1], [0], [0], [1], [0, 0, 1, 1], [], []>} : vector<8x128xbf16>, vector<128x256xbf16>, vector<8x256xf32> -> vector<8x256xf32>
    %11 = arith.addf %6, %10 : vector<8x256xf32>
    %12 = vector.extract_strided_slice %11 {offsets = [0, 0], sizes = [8, 128], strides = [1, 1]} : vector<8x256xf32> to vector<8x128xf32>
    %13 = math.tanh %12 : vector<8x128xf32>
    %14 = vector.extract_strided_slice %11 {offsets = [0, 128], sizes = [8, 128], strides = [1, 1]} : vector<8x256xf32> to vector<8x128xf32>
    %15 = arith.negf %14 : vector<8x128xf32>
    %16 = math.exp %15 : vector<8x128xf32>
    %cst_10 = arith.constant 1.000000e+00 : f32
    %17 = vector.broadcast %cst_10 : f32 to vector<8x128xf32>
    %18 = arith.addf %17, %16 : vector<8x128xf32>
    %19 = arith.divf %17, %18 : vector<8x128xf32>
    %c0_11 = arith.constant 0 : index
    %c0_12 = arith.constant 0 : index
    %20 = vector.load %arg10[%c0_11, %c0_12] : memref<8x128xf32, #tpu.memory_space<vmem>>, vector<8x128xf32>
    %21 = arith.subf %13, %20 : vector<8x128xf32>
    %22 = arith.mulf %19, %21 : vector<8x128xf32>
    %23 = arith.addf %20, %22 : vector<8x128xf32>
    %24 = arith.truncf %23 : vector<8x128xf32> to vector<8x128xbf16>
    %c0_13 = arith.constant 0 : index
    %c0_14 = arith.constant 0 : index
    %25 = vector.load %arg6[%c0_13, %c0_14] : memref<128x128xbf16, #tpu.memory_space<vmem>>, vector<128x128xbf16>
    %cst_15 = arith.constant dense<0.000000e+00> : vector<8x128xf32>
    %26 = tpu.matmul %24, %25, %cst_15 {dimension_numbers = #tpu.dot_dimension_numbers<[1], [0], [0], [1], [0, 0, 1, 1], [], []>} : vector<8x128xbf16>, vector<128x128xbf16>, vector<8x128xf32> -> vector<8x128xf32>
    %c0_16 = arith.constant 0 : index
    %c0_17 = arith.constant 0 : index
    %c0_18 = arith.constant 0 : index
    %27 = vector.load %arg7[%c0_16, %c0_17, %c0_18] : memref<1x8x128xf32, #tpu.memory_space<vmem>>, vector<1x8x128xf32>
    %28 = vector.shape_cast %27 : vector<1x8x128xf32> to vector<8x128xf32>
    %29 = vector.shape_cast %26 : vector<8x128xf32> to vector<1x8x128xf32>
    tpu.vector_store %arg7[%c0_16, %c0_17, %c0_18], %29 {strides = array<i32>} : memref<1x8x128xf32, #tpu.memory_space<vmem>>, vector<1x8x128xf32>,
    %c0_19 = arith.constant 0 : index
    %c0_20 = arith.constant 0 : index
    %c0_21 = arith.constant 0 : index
    %30 = vector.load %arg8[%c0_19, %c0_20, %c0_21] : memref<1x8x128xf32, #tpu.memory_space<vmem>>, vector<1x8x128xf32>
    %31 = vector.shape_cast %30 : vector<1x8x128xf32> to vector<8x128xf32>
    %32 = vector.shape_cast %23 : vector<8x128xf32> to vector<1x8x128xf32>
    tpu.vector_store %arg8[%c0_19, %c0_20, %c0_21], %32 {strides = array<i32>} : memref<1x8x128xf32, #tpu.memory_space<vmem>>, vector<1x8x128xf32>,
    %c0_22 = arith.constant 0 : index
    %c0_23 = arith.constant 0 : index
    %33 = vector.load %arg10[%c0_22, %c0_23] : memref<8x128xf32, #tpu.memory_space<vmem>>, vector<8x128xf32>
    tpu.vector_store %arg10[%c0_22, %c0_23], %23 {strides = array<i32>} : memref<8x128xf32, #tpu.memory_space<vmem>>, vector<8x128xf32>,
    %c0_24 = arith.constant 0 : index
    %c0_25 = arith.constant 0 : index
    %34 = vector.load %arg9[%c0_24, %c0_25] : memref<8x128xf32, #tpu.memory_space<vmem>>, vector<8x128xf32>
    tpu.vector_store %arg9[%c0_24, %c0_25], %23 {strides = array<i32>} : memref<8x128xf32, #tpu.memory_space<vmem>>, vector<8x128xf32>,
    return
  }
  func.func @transform_0(%arg0: i32) -> (i32, i32, i32) {
    %c0_i32 = arith.constant 0 : i32
    %c0_i32_0 = arith.constant 0 : i32
    %c0_i32_1 = arith.constant 0 : i32
    return %arg0, %c0_i32, %c0_i32_0 : i32, i32, i32
  }
  func.func @transform_1(%arg0: i32) -> (i32, i32) {
    %c0_i32 = arith.constant 0 : i32
    %c0_i32_0 = arith.constant 0 : i32
    %c0_i32_1 = arith.constant 0 : i32
    return %c0_i32, %c0_i32_0 : i32, i32
  }
  func.func @transform_2(%arg0: i32) -> (i32, i32) {
    %c0_i32 = arith.constant 0 : i32
    %c0_i32_0 = arith.constant 0 : i32
    %c0_i32_1 = arith.constant 0 : i32
    return %c0_i32, %c0_i32_0 : i32, i32
  }
  func.func @transform_3(%arg0: i32) -> (i32, i32) {
    %c0_i32 = arith.constant 0 : i32
    %c0_i32_0 = arith.constant 0 : i32
    %c0_i32_1 = arith.constant 0 : i32
    return %c0_i32, %c0_i32_0 : i32, i32
  }
  func.func @transform_4(%arg0: i32) -> (i32, i32) {
    %c0_i32 = arith.constant 0 : i32
    %c0_i32_0 = arith.constant 0 : i32
    %c0_i32_1 = arith.constant 0 : i32
    return %c0_i32, %c0_i32_0 : i32, i32
  }
  func.func @transform_5(%arg0: i32) -> (i32, i32) {
    %c0_i32 = arith.constant 0 : i32
    %c0_i32_0 = arith.constant 0 : i32
    %c0_i32_1 = arith.constant 0 : i32
    return %c0_i32, %c0_i32_0 : i32, i32
  }
  func.func @transform_6(%arg0: i32) -> (i32, i32, i32) {
    %c0_i32 = arith.constant 0 : i32
    %c0_i32_0 = arith.constant 0 : i32
    %c0_i32_1 = arith.constant 0 : i32
    return %arg0, %c0_i32, %c0_i32_0 : i32, i32, i32
  }
  func.func @transform_7(%arg0: i32) -> (i32, i32, i32) {
    %c0_i32 = arith.constant 0 : i32
    %c0_i32_0 = arith.constant 0 : i32
    %c0_i32_1 = arith.constant 0 : i32
    return %arg0, %c0_i32, %c0_i32_0 : i32, i32, i32
  }
}

</mosaic_0001>

<bundles_post_ra>
// kernel: tpu_custom_call.1
= control target key start
LH: loop header
LB: loop body
LE: loop exit
PB: predicated region body
PF: predicated region fallthrough
CT: control target
= control target key end

     0   :  { %13 = vsyncpa [#allocation5], 0  ;;  %s769_s0 = inlined_call_operand.hbm [shape: bf16[1,8,16], index: 0, kind: input, shape index: {}]   ;;  %s770_s1 = inlined_call_operand.vmem [shape: f32[1,128], index: 1, kind: input, shape index: {}]   ;;  %s771_s2 = inlined_call_operand.vmem [shape: f32[1,128], index: 2, kind: input, shape index: {}]   ;;  %s772_s3 = inlined_call_operand.hbm [shape: bf16[16,256], index: 3, kind: input, shape index: {}]   ;;  %s773_s4 = inlined_call_operand.hbm [shape: bf16[128,256], index: 4, kind: input, shape index: {}]   ;;  %s774_s5 = inlined_call_operand.hbm [shape: bf16[128,128], index: 5, kind: input, shape index: {}]   ;;  %s775_s6 = inlined_call_operand.hbm [shape: f32[1,8,128], index: 6, kind: output, shape index: {0}]   ;;  %s776_s7 = inlined_call_operand.hbm [shape: f32[1,8,128], index: 7, kind: output, shape index: {1}]  }
   0x1   :  { %14 = vsyncpa [#allocation8], 0 }
   0x2   :  { %15 = vsyncpa [#allocation11], 0 }
   0x3   :  { %16 = vsyncpa [#allocation6], 0 }
   0x4   :  { %17 = vsyncpa [#allocation14], 0  ;;  %s692_s24 = smov [#allocation7]  }
   0x5   :  { %s37_s25 = sshll.u32 %s692_s24, 4  ;;  %s38_s25 = int_to_ptr.vmem [resolvable:$true] %s37_s25 }
   0x6   :  { %s570_s26 = scalar_lea.vmem %s38_s25, 256  ;;  %p575_p1 = scmp.lt.s32.totalorder %s38_s25, %s38_s25 }
   0x7   :  { %p571_p0 = scmp.ne.s32.totalorder %s38_s25, %s570_s26  ;;  %p576_p2 = scmp.lt.s32.totalorder %s570_s26, %s570_s26 }
   0x9   :  { %p577_p3 = por %p576_p2, %p575_p1 }
   0xb   :  { %p578_p4 = pnand %p577_p3, %p571_p0 }
   0xd   :  { %581 = shalt.err (!%p578_p4)
}
   0xe   :  { %s693_s27 = smov 128   ;;  %s694_s28 = smov 8  }
   0xf   :  { %43 = dma.hbm_to_vmem [thread:$0]  %s772_s3, 256, %s38_s25, [#allocation8], %s693_s27, %s693_s27, %s694_s28  }
  0x10   :  { %s695_s8 = smov [#allocation4]   ;;  %s696_s10 = smov [#allocation9]  }
  0x11   :  { %s24_s9 = sshll.u32 %s695_s8, 4  ;;  %s49_s11 = sshll.u32 %s696_s10, 4  ;;  %s25_s9 = int_to_ptr.vmem [resolvable:$true] %s24_s9  ;;  %s50_s11 = int_to_ptr.vmem [resolvable:$true] %s49_s11 }
  0x12   :  { %s590_s12 = scalar_lea.vmem %s25_s9, 64  ;;  %p595_p6 = scmp.lt.s32.totalorder %s25_s9, %s25_s9 }
  0x13   :  { %p591_p5 = scmp.ne.s32.totalorder %s25_s9, %s590_s12  ;;  %p596_p7 = scmp.lt.s32.totalorder %s590_s12, %s590_s12 }
  0x15   :  { %p597_p8 = por %p596_p7, %p595_p6 }
  0x17   :  { %p598_p9 = pnand %p597_p8, %p591_p5 }
  0x19   :  { %601 = shalt.err (!%p598_p9)
}
  0x1a   :  { %27 = dma.hbm_to_vmem [thread:$0]  %s769_s0, 64, %s25_s9, [#allocation5]  }
  0x1b   :  { %s610_s15 = scalar_lea.vmem %s50_s11, 2048  ;;  %p615_p11 = scmp.lt.s32.totalorder %s50_s11, %s50_s11 }
  0x1c   :  { %p611_p10 = scmp.ne.s32.totalorder %s50_s11, %s610_s15  ;;  %p616_p12 = scmp.lt.s32.totalorder %s610_s15, %s610_s15 }
  0x1e   :  { %p617_p13 = por %p616_p12, %p615_p11 }
  0x20   :  { %p618_p0 = pnand %p617_p13, %p611_p10 }
  0x22   :  { %621 = shalt.err (!%p618_p0)
}
  0x23   :  { %55 = dma.hbm_to_vmem [thread:$0]  %s773_s4, 2048, %s50_s11, [#allocation8], %s693_s27, %s693_s27, %s694_s28  }
  0x24   :  { %s697_s17 = smov [#allocation10]  }
  0x25   :  { %s61_s18 = sshll.u32 %s697_s17, 4  ;;  %s62_s18 = int_to_ptr.vmem [resolvable:$true] %s61_s18 }
  0x26   :  { %s630_s19 = scalar_lea.vmem %s62_s18, 1024  ;;  %p635_p2 = scmp.lt.s32.totalorder %s62_s18, %s62_s18 }
  0x27   :  { %p631_p1 = scmp.ne.s32.totalorder %s62_s18, %s630_s19  ;;  %p636_p3 = scmp.lt.s32.totalorder %s630_s19, %s630_s19 }
  0x29   :  { %p637_p4 = por %p636_p3, %p635_p2 }
  0x2b   :  { %p638_p5 = pnand %p637_p4, %p631_p1 }
  0x2d   :  { %641 = shalt.err (!%p638_p5)
}
  0x2e   :  { %s698_s0 = smov 64   ;;  %s699_s20 = smov 4  }
  0x2f   :  { %67 = dma.hbm_to_vmem [thread:$0]  %s774_s5, 1024, %s62_s18, [#allocation11], %s698_s0, %s698_s0, %s699_s20  }
  0x30   :  { %682 = dma.done.wait [#allocation5], 64  }
  0x31   :  { %683 = vsyncadd [#allocation5], 4294967232 }
  0x32   :  { %684 = dma.done.wait [#allocation8], 2304  }
  0x33   :  { %685 = vsyncadd [#allocation8], 4294964992 }
  0x34   :  { %686 = dma.done.wait [#allocation11], 1024  }
  0x35   :  { %687 = vsyncadd [#allocation11], 4294966272  ;;  %v700_v0 = vmov 0   ;;  %v521_v1 = vld [vmem:[#allocation9 + $0x74] ss:$8 sps:$4 sm:$0xff]   ;;  %vm253_vm0 = vcmask 130048  }
  0x36   :  { %289 = vmatprep.mubr.bf16.mxu1 %v700_v0  ;;  %234 = vmatprep.mubr.bf16.mxu0 %v700_v0  ;;  %v523_v2 = vld [vmem:[#allocation9 + $0x70] ss:$8 sps:$4 sm:$0xff]   ;;  %v524_v3 = vld [vmem:[#allocation9 + $0x64] ss:$8 sps:$4 sm:$0xff]   ;;  %v526_v4 = vld [vmem:[#allocation9 + $0x60] ss:$8 sps:$4 sm:$0xff]  }
  0x37   :  { %202 = vmatprep.subr.bf16.mxu0 %v521_v1  ;;  %v527_v5 = vld [vmem:[#allocation9 + $0x54] ss:$8 sps:$4 sm:$0xff]   ;;  %v529_v6 = vld [vmem:[#allocation9 + $0x50] ss:$8 sps:$4 sm:$0xff]   ;;  %v530_v7 = vld [vmem:[#allocation9 + $0x44] ss:$8 sps:$4 sm:$0xff]  }
  0x38   :  { %203 = vmatpush1.bf16.msra.mxu0 %v523_v2  ;;  %v539_v8 = vld [vmem:[#allocation7 + $0x4] ss:$8 sps:$4 sm:$0xff]   ;;  %v541_v9 = vld [vmem:[#allocation7] ss:$8 sps:$4 sm:$0xff]   ;;  %v532_v10 = vld [vmem:[#allocation9 + $0x40] ss:$8 sps:$4 sm:$0xff]  }
  0x39   :  { %204 = vmatprep.subr.bf16.mxu0 %v524_v3  ;;  %271 = vmatprep.subr.bf16.mxu1 %v539_v8  ;;  %v101_v11 = vld [vmem:[#allocation4] sm:$0xf]  ;;  %v533_v12 = vld [vmem:[#allocation9 + $0x34] ss:$8 sps:$4 sm:$0xff]   ;;  %v535_v13 = vld [vmem:[#allocation9 + $0x30] ss:$8 sps:$4 sm:$0xff]  }
  0x3a   :  { %272 = vmatpush1.bf16.msra.mxu1 %v541_v9  ;;  %v536_v14 = vld [vmem:[#allocation9 + $0x24] ss:$8 sps:$4 sm:$0xff]   ;;  %v538_v15 = vld [vmem:[#allocation9 + $0x20] ss:$8 sps:$4 sm:$0xff]   ;;  %v542_v16 = vld [vmem:[#allocation9 + $0x14] ss:$8 sps:$4 sm:$0xff]  }
  0x3b   :  { %v544_v17 = vld [vmem:[#allocation9 + $0x10] ss:$8 sps:$4 sm:$0xff]   ;;  %v545_v18 = vld [vmem:[#allocation9 + $0x4] ss:$8 sps:$4 sm:$0xff]   ;;  %v547_v19 = vld [vmem:[#allocation9] ss:$8 sps:$4 sm:$0xff]  }
  0x3c   :  { %205 = vmatpush1.bf16.msra.mxu0 %v526_v4  ;;  %v449_v20 = vld [vmem:[%s770_s1] ss:$0 sm:$0xff]  ;;  %v548_v22 = vld [vmem:[#allocation10 + $0x38] sm:$0xff]   ;;  %v701_v23 = vmov 0.0   ;;  %v549_v24 = vld [vmem:[#allocation10 + $0x30] sm:$0xff]   ;;  %vm702_vm1 = vmmov 0  }
  0x3d   :  { %206 = vmatprep.subr.bf16.mxu0 %v527_v5  ;;  %469 = vmatmul.mubr.msk.bf16.vlgmr.msra.gmra.mxu1 %vm253_vm0, %v101_v11  ;;  %v105_v21 = vpack.c.bf16 %v449_v20, %v449_v20  ;;  %v550_v25 = vld [vmem:[#allocation10 + $0x28] sm:$0xff]   ;;  %v551_v26 = vld [vmem:[#allocation10 + $0x20] sm:$0xff]   ;;  %v552_v27 = vld [vmem:[#allocation10 + $0x18] sm:$0xff]   ;;  %s703_s24 = smov [#allocation13]  }
  0x3e   :  { %488 = vmatprep.subr.bf16.mxu1 %v701_v23  ;;  %504 = vmatprep.mubr.msk.bf16.mxu1 %vm702_vm1, %v701_v23  ;;  %v553_v28 = vld [vmem:[#allocation10 + $0x10] sm:$0xff]   ;;  %v554_v29 = vld [vmem:[#allocation10 + $0x8] sm:$0xff]   ;;  %v555_v30 = vld [vmem:[#allocation10] sm:$0xff]   ;;  %s434_s25 = sshll.u32 %s703_s24, 4  ;;  %s435_s25 = int_to_ptr.vmem [resolvable:$true] %s434_s25 }
  0x3f   :  { %489 = vmatpush3.bf16.msra.mxu1 %v548_v22  ;;  %v450_v45 = vld [vmem:[%s771_s2] ss:$0 sm:$0xff]  ;;  %s642_s26 = scalar_lea.vmem %s435_s25, 128  ;;  %p647_p7 = scmp.lt.s32.totalorder %s435_s25, %s435_s25 }
  0x40   :  { %207 = vmatpush1.bf16.msra.mxu0 %v529_v6  ;;  %490 = vmatprep.subr.bf16.mxu1 %v701_v23  ;;  %p643_p6 = scmp.ne.s32.totalorder %s435_s25, %s642_s26  ;;  %p648_p8 = scmp.lt.s32.totalorder %s642_s26, %s642_s26 }
  0x41   :  { %208 = vmatprep.subr.bf16.mxu0 %v530_v7 }
  0x42   :  { %p649_p9 = por %p648_p8, %p647_p7 }
  0x43   :  { %491 = vmatpush3.bf16.msra.mxu1 %v549_v24 }
  0x44   :  { %209 = vmatpush1.bf16.msra.mxu0 %v532_v10  ;;  %492 = vmatprep.subr.bf16.mxu1 %v701_v23  ;;  %p650_p10 = pnand %p649_p9, %p643_p6 }
  0x45   :  { %210 = vmatprep.subr.bf16.mxu0 %v533_v12 }
  0x47   :  { %493 = vmatpush3.bf16.msra.mxu1 %v550_v25 }
  0x48   :  { %211 = vmatpush1.bf16.msra.mxu0 %v535_v13  ;;  %494 = vmatprep.subr.bf16.mxu1 %v701_v23 }
  0x49   :  { %212 = vmatprep.subr.bf16.mxu0 %v536_v14 }
  0x4b   :  { %495 = vmatpush3.bf16.msra.mxu1 %v551_v26 }
  0x4c   :  { %213 = vmatpush1.bf16.msra.mxu0 %v538_v15  ;;  %496 = vmatprep.subr.bf16.mxu1 %v701_v23 }
  0x4d   :  { %214 = vmatprep.subr.bf16.mxu0 %v542_v16 }
  0x4f   :  { %497 = vmatpush3.bf16.msra.mxu1 %v552_v27 }
  0x50   :  { %215 = vmatpush1.bf16.msra.mxu0 %v544_v17  ;;  %498 = vmatprep.subr.bf16.mxu1 %v701_v23 }
  0x51   :  { %216 = vmatprep.subr.bf16.mxu0 %v545_v18 }
  0x53   :  { %499 = vmatpush3.bf16.msra.mxu1 %v553_v28 }
  0x54   :  { %217 = vmatpush1.bf16.msra.mxu0 %v547_v19  ;;  %500 = vmatprep.subr.bf16.mxu1 %v701_v23 }
  0x57   :  { %235 = vmatmul.mubr.bf16.vlgmr.msra.gmra.mxu0 %v105_v21  ;;  %501 = vmatpush3.bf16.msra.mxu1 %v554_v29 }
  0x58   :  { %502 = vmatprep.subr.bf16.mxu1 %v701_v23 }
  0x5b   :  { %503 = vmatpush3.bf16.msra.mxu1 %v555_v30 }
  0xfd   :  { %v291_v31 = vpop.f32.mrf.mxu1 }
  0xff   :  { %v293_v32 = vpop.f32.mrf.mxu1 }
 0x101   :  { %v295_v33 = vpop.f32.mrf.mxu1 }
 0x103   :  { %v296_v34 = vpop.f32.mrf.mxu1 }
 0x117   :  { %v236_v35 = vpop.f32.mrf.mxu0 }
 0x118   :  { %v292_v41 = vadd.f32 %v291_v31, %v236_v35 }
 0x119   :  { %v238_v36 = vpop.f32.mrf.mxu0 }
 0x11a   :  { %v294_v37 = vadd.f32 %v293_v32, %v238_v36 }
 0x11b   :  { %v240_v38 = vpop.f32.mrf.mxu0 }
 0x11c   :  { %v470_v39 = vmul.f32 -1.442695, %v294_v37 }
 0x11d   :  { %v241_v40 = vpop.f32.mrf.mxu0 }
 0x11e   :  { %556 = vpow2.f32 %v470_v39 }
 0x11f   :  { %558 = vtanh.f32 %v292_v41 }
 0x12b   :  { %v557_v42 = vpop.eup %556 }
 0x12c   :  { %v302_v43 = vadd.f32 1.0, %v557_v42  ;;  %v559_v44 = vpop.eup %558 }
 0x12d   :  { %v306_v46 = vsub.f32 %v559_v44, %v450_v45 }
 0x12e   :  { %560 = vrcp.f32 %v302_v43 }
 0x13b   :  { %v561_v47 = vpop.eup %560 }
 0x13c   :  { %v307_v48 = vmul.f32 %v561_v47, %v306_v46 }
 0x13e   :  { %v308_v49 = vadd.f32 %v450_v45, %v307_v48 }
 0x140   :  { %v309_v50 = vpack.c.bf16 %v308_v49, %v308_v49  ;;  %415 = vst [vmem:[#allocation13] sm:$0xff] %v308_v49 }
 0x142   :  { %505 = vmatmul.mubr.bf16.vlgmr.msra.gmra.mxu1 %v309_v50 }
 0x143   :  { %653 = shalt.err (!%p650_p10)
}
 0x144   :  { %437 = dma.vmem_to_hbm [thread:$0]  %s435_s25, 128, %s776_s7, [#allocation14]  }
 0x145   :  { %s704_s2 = smov [#allocation12]  }
 0x146   :  { %s424_s29 = sshll.u32 %s704_s2, 4  ;;  %s425_s29 = int_to_ptr.vmem [resolvable:$true] %s424_s29 }
 0x147   :  { %s662_s30 = scalar_lea.vmem %s425_s29, 128  ;;  %p667_p12 = scmp.lt.s32.totalorder %s425_s29, %s425_s29 }
 0x148   :  { %p663_p11 = scmp.ne.s32.totalorder %s425_s29, %s662_s30  ;;  %p668_p13 = scmp.lt.s32.totalorder %s662_s30, %s662_s30 }
 0x14a   :  { %p669_p0 = por %p668_p13, %p667_p12 }
 0x14c   :  { %p670_p1 = pnand %p669_p0, %p663_p11 }
 0x202   :  { %v408_v51 = vpop.f32.mrf.mxu1 }
 0x203   :  { %414 = vst [vmem:[#allocation12] sm:$0xff] %v408_v51 }
 0x204   :  { %v506_v52 = vpop.f32.mrf.mxu1 }
 0x205   :  { %673 = shalt.err (!%p670_p1)
}
 0x206   :  { %427 = dma.vmem_to_hbm [thread:$0]  %s425_s29, 128, %s775_s6, [#allocation6]   ;;  %v411_v53 = vpop.f32.mrf.mxu1 }
 0x208   :  { %v507_v54 = vpop.f32.mrf.mxu1 }
 0x209   :  { %688 = dma.done.wait [#allocation6], 128  }
 0x20a   :  { %689 = vsyncadd [#allocation6], 4294967168 }
 0x20b   :  { %690 = dma.done.wait [#allocation14], 128  }
 0x20c   :  { %691 = vsyncadd [#allocation14], 4294967168 }
 0x20d   :  { %444 = vsyncpa [#allocation5], 1 }
 0x20e   :  { %445 = vsyncpa [#allocation8], 1 }
 0x20f   :  { %446 = vsyncpa [#allocation11], 1 }
 0x210   :  { %447 = vsyncpa [#allocation6], 1 }
 0x211   :  { %448 = vsyncpa [#allocation14], 1 }

</bundles_post_ra>
